<compile_context>
chip_gen: v6e
topology: v6e:2x2x1
jax: 0.10.0
libtpu: 0.0.40
codegen_flags: <defaults>
</compile_context>

<pallas_src>
import math

import jax
import jax.numpy as jnp
from jax.experimental import pallas as pl
from jax.experimental.pallas import tpu as pltpu

D_BERT = 768   # BERT hidden size / conv input channels
D_CONV = 100   # conv output channels == attention embed dim (unpadded)
D_PAD = 128    # D_CONV zero-padded to a full 128-lane tile
KER = 2        # conv kernel size (causal: left pad KER-1)
LANE = 128

PACKED_ORDER = ("w01", "cb", "wqkv", "bqkv", "wout", "bout")


def ner_kernel(enc_ref, w01_ref, cb_ref, wqkv_ref, bqkv_ref,
               wout_ref, bout_ref, logits_ref):
    BB, T, D = enc_ref.shape          # BB sequences per grid step
    DP = D_PAD
    M = BB * T

    # Flatten the BB sequences into one (M, 768) slab so the dominant matmuls
    # feed the MXU with M rows instead of T.
    x = enc_ref[...].reshape(M, D)                                   # bf16

    # --- causal Conv1d(768 -> 100, k=2, padding=(1, 0)):
    #     conv[t] = x[t-1] @ W0 + x[t] @ W1 + b     (x[-1] == 0 per sequence)
    # Both taps in one (M,768)x(768,256) matmul; split lane-aligned columns.
    taps = jnp.dot(x, w01_ref[...], preferred_element_type=jnp.float32)
    tap0 = taps[:, :DP]
    tap1 = taps[:, DP:]
    # Per-sequence causal shift: XLU sublane roll of the narrow (M, 128)
    # product; the roll wraps across sequence boundaries, so zero the first
    # row of every sequence with a cheap iota mask (one VPU select).
    tap0 = pltpu.roll(tap0, shift=1, axis=0)
    row = jax.lax.broadcasted_iota(jnp.int32, (M, DP), 0)
    tap0 = jnp.where(row % T == 0, 0.0, tap0)
    conv = tap0 + tap1 + cb_ref[...]                                 # f32

    # --- MultiheadAttention(100, num_heads=1), self-attention, inference.
    # Fused Q/K/V projection: one (M, 128) x (128, 384) matmul.  The
    # 1/sqrt(100) softmax scale is already folded into the Q weights/bias.
    qkv = (jnp.dot(conv.astype(jnp.bfloat16), wqkv_ref[...],
                   preferred_element_type=jnp.float32) + bqkv_ref[...])
    q = qkv[:, 0 * DP:1 * DP].reshape(BB, T, DP).astype(jnp.bfloat16)
    k = qkv[:, 1 * DP:2 * DP].reshape(BB, T, DP).astype(jnp.bfloat16)
    v = qkv[:, 2 * DP:3 * DP].reshape(BB, T, DP).astype(jnp.bfloat16)

    # Per-sequence scores / softmax / context (batched einsum over BB).
    # Zero-padded channels contribute nothing to the dot products.
    s = jnp.einsum("btc,bsc->bts", q, k, preferred_element_type=jnp.float32)
    s = s - jnp.max(s, axis=-1, keepdims=True)
    p = jnp.exp(s)                     # s is dead after this; one (BB,T,T) live
    p = p * pl.reciprocal(jnp.sum(p, axis=-1, keepdims=True), approx=True)
    ctx = jnp.einsum("bts,bsc->btc", p.astype(jnp.bfloat16), v,
                     preferred_element_type=jnp.float32)             # (BB,T,DP)

    # --- out-projection folded into fc host-side:
    #     logits = ctx @ (wo @ wfc) + (bo @ wfc + bfc)
    logits = (jnp.dot(ctx.reshape(M, DP).astype(jnp.bfloat16), wout_ref[...],
                      preferred_element_type=jnp.float32) + bout_ref[...])
    logits_ref[...] = logits.reshape(BB, T, logits_ref.shape[-1]).astype(
        logits_ref.dtype)


def _prepare_params(params):
    """Host-side packing: pad channels 100->128, fuse taps/QKV, fold wo into
    fc and the softmax scale into Q, bf16 weights / f32 biases."""
    pc = D_PAD - D_CONV
    tag = params["wfc"].shape[1]
    tag_pad = pl.cdiv(tag, LANE) * LANE
    inv_scale = 1.0 / math.sqrt(D_CONV)

    def pad_cols(a):      # (r, 100) -> (r, 128)
        return jnp.pad(a, ((0, 0), (0, pc)))

    def pad_square(a):    # (100, 100) -> (128, 128)
        return jnp.pad(a, ((0, pc), (0, pc)))

    # fused conv taps: one (768, 256) weight -> single 256-wide MXU pass
    w01 = jnp.concatenate([pad_cols(params["w0"]), pad_cols(params["w1"])],
                          axis=1)

    # fused QKV with the 1/sqrt(d) scale folded into the Q columns
    wq = params["wq"] * inv_scale
    bq = params["bq"] * inv_scale
    wqkv = jnp.concatenate(
        [pad_square(wq), pad_square(params["wk"]), pad_square(params["wv"])],
        axis=1)                                                       # (128,384)
    bqkv = jnp.concatenate(
        [pad_cols(bq), pad_cols(params["bk"]), pad_cols(params["bv"])],
        axis=1)                                                       # (1,384)

    # fold attention out-projection into fc (no nonlinearity in between)
    wout = params["wo"] @ params["wfc"]                               # (100,tag)
    bout = params["bo"] @ params["wfc"] + params["bfc"]               # (1,tag)
    wout = jnp.pad(wout, ((0, pc), (0, tag_pad - tag)))
    # padded tag columns get a huge negative bias so an argmax over the padded
    # slab would also be correct (the wrapper slices anyway).
    bout = jnp.pad(bout, ((0, 0), (0, tag_pad - tag)),
                   constant_values=-1e30)

    packed = {
        "w01": w01.astype(jnp.bfloat16),        # (768, 256)
        "cb": pad_cols(params["cb"]).astype(jnp.float32),             # (1,128)
        "wqkv": wqkv.astype(jnp.bfloat16),      # (128, 384)
        "bqkv": bqkv.astype(jnp.float32),       # (1, 384)
        "wout": wout.astype(jnp.bfloat16),      # (128, tag_pad)
        "bout": bout.astype(jnp.float32),       # (1, tag_pad)
    }
    return packed, tag, tag_pad


def _pick_block_batch(B, T, target_rows=1024):
    """Sequences per grid step.  Target ~1024 matmul rows per step (kernel is
    HBM-bound; bigger blocks amortize the ~0.35 us per-step overhead), but
    keep at least 2 grid steps whenever B >= 2 so both v7x TensorCores get
    work.  B is padded up to a multiple of the block in the wrapper."""
    bb = max(1, target_rows // max(T, 1))
    if B >= 2:
        bb = min(bb, pl.cdiv(B, 2))
    return max(1, min(bb, B))


def ner_forward(enc, y, params):
    """Returns (logits, y, y_hat) like NERModel.forward (BERT part excluded)."""
    B, T, D = enc.shape
    assert D == D_BERT

    packed, tag_size, tag_pad = _prepare_params(params)
    # bf16 operands: halves HBM bytes of the dominant enc stream; MXU is
    # bf16-native.  Accumulation stays f32 inside the kernel.
    enc_b = enc.astype(jnp.bfloat16)

    BB = _pick_block_batch(B, T)
    B_pad = pl.cdiv(B, BB) * BB
    if B_pad != B:
        enc_b = jnp.pad(enc_b, ((0, B_pad - B), (0, 0), (0, 0)))
    grid = (B_pad // BB,)

    def const_spec(a):
        nd = a.ndim
        return pl.BlockSpec(a.shape, lambda b, _nd=nd: (0,) * _nd)

    in_specs = [pl.BlockSpec((BB, T, D), lambda b: (b, 0, 0))]
    in_specs += [const_spec(packed[k]) for k in PACKED_ORDER]

    # bf16 logits slab: halves the output HBM stream (f32 acc stays in-kernel)
    out_shape = jax.ShapeDtypeStruct((B_pad, T, tag_pad), jnp.bfloat16)
    out_specs = pl.BlockSpec((BB, T, tag_pad), lambda b: (b, 0, 0))

    M_tot = B_pad * T
    flops = 2 * M_tot * (D_BERT * 2 * D_PAD        # fused conv taps (N=256)
                         + D_PAD * 3 * D_PAD       # fused qkv projection
                         + T * D_PAD * 2           # scores + context
                         + D_PAD * tag_pad)        # folded out-proj + fc
    bytes_accessed = (enc_b.size * enc_b.dtype.itemsize
                      + M_tot * tag_pad * 2
                      + sum(int(v.size) * v.dtype.itemsize
                            for v in packed.values()))
    cost = pl.CostEstimate(flops=int(flops),
                           transcendentals=int(M_tot * T),
                           bytes_accessed=int(bytes_accessed))

    logits_pad = pl.pallas_call(
        ner_kernel,
        out_shape=out_shape,
        grid_spec=pltpu.PrefetchScalarGridSpec(
            num_scalar_prefetch=0,
            grid=grid,
            in_specs=in_specs,
            out_specs=out_specs),
        compiler_params=pltpu.CompilerParams(
            dimension_semantics=("parallel",),
            # above v5e's 16 MiB / v6e-v7x's 32 MiB scoped defaults, below
            # v7x's 64 MiB physical
            vmem_limit_bytes=48 * 1024 * 1024),
        cost_estimate=cost,
    )(enc_b, *[packed[k] for k in PACKED_ORDER])

    # drop batch padding and padded tag columns; tiny argmax in the wrapper so
    # the kernel keeps a lane-dense store
    logits = logits_pad[:B, :, :tag_size].astype(jnp.float32)
    y_hat = jnp.argmax(logits, axis=-1)
    return logits, y, y_hat


def ref_forward(enc, params):
    """Pure-JAX f32 reference of the same math (for a sanity check)."""
    x_prev = jnp.pad(enc, ((0, 0), (1, 0), (0, 0)))[:, :-1, :]
    conv = (jnp.einsum("btd,dc->btc", x_prev, params["w0"])
            + jnp.einsum("btd,dc->btc", enc, params["w1"])
            + params["cb"])
    q = conv @ params["wq"] + params["bq"]
    k = conv @ params["wk"] + params["bk"]
    v = conv @ params["wv"] + params["bv"]
    s = jnp.einsum("btc,bsc->bts", q, k) / math.sqrt(D_CONV)
    p = jax.nn.softmax(s, axis=-1)
    ctx = jnp.einsum("bts,bsc->btc", p, v)
    att = ctx @ params["wo"] + params["bo"]
    return att @ params["wfc"] + params["bfc"]


def make_params(key, tag_size):
    ks = jax.random.split(key, 13)

    def init(k, shape, scale):
        return (scale * jax.random.normal(k, shape)).astype(jnp.float32)

    return {
        # conv weight taps, pre-transposed: (Cin=768, Cout=100) each
        "w0": init(ks[0], (D_BERT, D_CONV), 0.02),
        "w1": init(ks[1], (D_BERT, D_CONV), 0.02),
        "cb": init(ks[2], (1, D_CONV), 0.02),
        # attention in-proj (q/k/v), pre-transposed: (E, E)
        "wq": init(ks[3], (D_CONV, D_CONV), 0.1),
        "wk": init(ks[4], (D_CONV, D_CONV), 0.1),
        "wv": init(ks[5], (D_CONV, D_CONV), 0.1),
        "bq": init(ks[6], (1, D_CONV), 0.02),
        "bk": init(ks[7], (1, D_CONV), 0.02),
        "bv": init(ks[8], (1, D_CONV), 0.02),
        # attention out-proj, pre-transposed
        "wo": init(ks[9], (D_CONV, D_CONV), 0.1),
        "bo": init(ks[10], (1, D_CONV), 0.02),
        # fc: Linear(100, tag_size), pre-transposed
        "wfc": init(ks[11], (D_CONV, tag_size), 0.1),
        "bfc": init(ks[12], (1, tag_size), 0.02),
    }


if __name__ == "__main__":
    B, T, TAG = 2, 8, 10
    key = jax.random.PRNGKey(0)
    k_enc, k_y, k_par = jax.random.split(key, 3)

    # TODO(synk): `x` (token ids) would feed BERT; enc stands in for BERT's
    # last encoded layer.
    enc = jax.random.normal(k_enc, (B, T, D_BERT), dtype=jnp.float32)
    y = jax.random.randint(k_y, (B, T), 0, TAG, dtype=jnp.int32)
    params = make_params(k_par, TAG)

    logits, y_out, y_hat = ner_forward(enc, y, params)
    jax.block_until_ready((logits, y_out, y_hat))

    # sanity checks against the pure-JAX f32 reference
    ref_logits = ref_forward(enc, params)
    assert logits.shape == (B, T, TAG) and y_hat.shape == (B, T)
    assert jnp.allclose(logits, ref_logits, rtol=5e-2, atol=5e-2), "logits mismatch"
    assert jnp.array_equal(y_hat, jnp.argmax(logits, axis=-1)), "argmax mismatch"
    assert jnp.array_equal(y_out, y), "y passthrough mismatch"

    print("KERNEL_OK")
</pallas_src>

<mosaic_0001>
module attributes {stable_mosaic.version = 11 : i64} {
  func.func @ner_kernel(%arg0: i32, %arg1: memref<1x8x768xbf16, #tpu.memory_space<vmem>>, %arg2: memref<768x256xbf16, #tpu.memory_space<vmem>>, %arg3: memref<1x128xf32, #tpu.memory_space<vmem>>, %arg4: memref<128x384xbf16, #tpu.memory_space<vmem>>, %arg5: memref<1x384xf32, #tpu.memory_space<vmem>>, %arg6: memref<128x128xbf16, #tpu.memory_space<vmem>>, %arg7: memref<1x128xf32, #tpu.memory_space<vmem>>, %arg8: memref<1x8x128xbf16, #tpu.memory_space<vmem>>) attributes {dimension_semantics = [#tpu.dimension_semantics<parallel>], iteration_bounds = array<i64: 2>, scalar_prefetch = 0 : i64, scratch_operands = 0 : i64, tpu.core_type = #tpu.core_type<tc>, window_params = [{transform_indices = @transform_0, window_bounds = array<i64: 1, 8, 768>}, {pipeline_mode = #tpu.pipeline_mode<synchronous>, transform_indices = @transform_1, window_bounds = array<i64: 768, 256>}, {pipeline_mode = #tpu.pipeline_mode<synchronous>, transform_indices = @transform_2, window_bounds = array<i64: 1, 128>}, {pipeline_mode = #tpu.pipeline_mode<synchronous>, transform_indices = @transform_3, window_bounds = array<i64: 128, 384>}, {pipeline_mode = #tpu.pipeline_mode<synchronous>, transform_indices = @transform_4, window_bounds = array<i64: 1, 384>}, {pipeline_mode = #tpu.pipeline_mode<synchronous>, transform_indices = @transform_5, window_bounds = array<i64: 128, 128>}, {pipeline_mode = #tpu.pipeline_mode<synchronous>, transform_indices = @transform_6, window_bounds = array<i64: 1, 128>}, {transform_indices = @transform_7, window_bounds = array<i64: 1, 8, 128>}]} {
    %c0 = arith.constant 0 : index
    %c0_0 = arith.constant 0 : index
    %c0_1 = arith.constant 0 : index
    %0 = vector.load %arg1[%c0, %c0_0, %c0_1] : memref<1x8x768xbf16, #tpu.memory_space<vmem>>, vector<1x8x768xbf16>
    %1 = vector.shape_cast %0 : vector<1x8x768xbf16> to vector<8x768xbf16>
    %c0_2 = arith.constant 0 : index
    %c0_3 = arith.constant 0 : index
    %2 = vector.load %arg2[%c0_2, %c0_3] : memref<768x256xbf16, #tpu.memory_space<vmem>>, vector<768x256xbf16>
    %cst = arith.constant dense<0.000000e+00> : vector<8x256xf32>
    %3 = tpu.matmul %1, %2, %cst {dimension_numbers = #tpu.dot_dimension_numbers<[1], [0], [0], [1], [0, 0, 1, 1], [], []>} : vector<8x768xbf16>, vector<768x256xbf16>, vector<8x256xf32> -> vector<8x256xf32>
    %4 = vector.extract_strided_slice %3 {offsets = [0, 0], sizes = [8, 128], strides = [1, 1]} : vector<8x256xf32> to vector<8x128xf32>
    %5 = vector.extract_strided_slice %3 {offsets = [0, 128], sizes = [8, 128], strides = [1, 1]} : vector<8x256xf32> to vector<8x128xf32>
    %c1_i32 = arith.constant 1 : i32
    %6 = tpu.dynamic_rotate %4 by %c1_i32 dim 0 : vector<8x128xf32>, i32 -> vector<8x128xf32>
    %7 = tpu.iota {dimensions = array<i32: 0>} : vector<8x128xi32>
    %c8_i32 = arith.constant 8 : i32
    %c0_i32 = arith.constant 0 : i32
    %8 = arith.cmpi eq, %c8_i32, %c0_i32 : i32
    %c1_i32_4 = arith.constant 1 : i32
    %9 = arith.select %8, %c1_i32_4, %c8_i32 : i32
    %10 = vector.broadcast %9 : i32 to vector<8x128xi32>
    %11 = arith.remsi %7, %10 : vector<8x128xi32>
    %c0_i32_5 = arith.constant 0 : i32
    %12 = vector.broadcast %c0_i32_5 : i32 to vector<8x128xi32>
    %13 = arith.cmpi ne, %11, %12 : vector<8x128xi32>
    %c0_i32_6 = arith.constant 0 : i32
    %14 = vector.broadcast %c0_i32_6 : i32 to vector<8x128xi32>
    %15 = arith.cmpi slt, %11, %14 : vector<8x128xi32>
    %c0_i32_7 = arith.constant 0 : i32
    %16 = arith.cmpi slt, %9, %c0_i32_7 : i32
    %17 = vector.broadcast %16 : i1 to vector<8x128xi1>
    %18 = vector.broadcast %17 : vector<8x128xi1> to vector<8x128xi1>
    %19 = arith.xori %15, %18 : vector<8x128xi1>
    %20 = arith.andi %19, %13 : vector<8x128xi1>
    %21 = vector.broadcast %9 : i32 to vector<8x128xi32>
    %22 = arith.addi %11, %21 : vector<8x128xi32>
    %23 = arith.select %20, %22, %11 : vector<8x128xi1>, vector<8x128xi32>
    %c0_i32_8 = arith.constant 0 : i32
    %24 = vector.broadcast %c0_i32_8 : i32 to vector<8x128xi32>
    %25 = arith.cmpi eq, %23, %24 : vector<8x128xi32>
    %cst_9 = arith.constant 0.000000e+00 : f32
    %26 = vector.broadcast %cst_9 : f32 to vector<8x128xf32>
    %27 = arith.select %25, %26, %6 : vector<8x128xi1>, vector<8x128xf32>
    %28 = arith.addf %27, %5 : vector<8x128xf32>
    %c0_10 = arith.constant 0 : index
    %c0_11 = arith.constant 0 : index
    %29 = vector.load %arg3[%c0_10, %c0_11] : memref<1x128xf32, #tpu.memory_space<vmem>>, vector<1x128xf32>
    %30 = vector.broadcast %29 : vector<1x128xf32> to vector<8x128xf32>
    %31 = arith.addf %28, %30 : vector<8x128xf32>
    %32 = arith.truncf %31 : vector<8x128xf32> to vector<8x128xbf16>
    %c0_12 = arith.constant 0 : index
    %c0_13 = arith.constant 0 : index
    %33 = vector.load %arg4[%c0_12, %c0_13] : memref<128x384xbf16, #tpu.memory_space<vmem>>, vector<128x384xbf16>
    %cst_14 = arith.constant dense<0.000000e+00> : vector<8x384xf32>
    %34 = tpu.matmul %32, %33, %cst_14 {dimension_numbers = #tpu.dot_dimension_numbers<[1], [0], [0], [1], [0, 0, 1, 1], [], []>} : vector<8x128xbf16>, vector<128x384xbf16>, vector<8x384xf32> -> vector<8x384xf32>
    %c0_15 = arith.constant 0 : index
    %c0_16 = arith.constant 0 : index
    %35 = vector.load %arg5[%c0_15, %c0_16] : memref<1x384xf32, #tpu.memory_space<vmem>>, vector<1x384xf32>
    %36 = vector.broadcast %35 : vector<1x384xf32> to vector<8x384xf32>
    %37 = arith.addf %34, %36 : vector<8x384xf32>
    %38 = vector.extract_strided_slice %37 {offsets = [0, 0], sizes = [8, 128], strides = [1, 1]} : vector<8x384xf32> to vector<8x128xf32>
    %39 = vector.shape_cast %38 : vector<8x128xf32> to vector<1x8x128xf32>
    %40 = arith.truncf %39 : vector<1x8x128xf32> to vector<1x8x128xbf16>
    %41 = vector.extract_strided_slice %37 {offsets = [0, 128], sizes = [8, 128], strides = [1, 1]} : vector<8x384xf32> to vector<8x128xf32>
    %42 = vector.shape_cast %41 : vector<8x128xf32> to vector<1x8x128xf32>
    %43 = arith.truncf %42 : vector<1x8x128xf32> to vector<1x8x128xbf16>
    %44 = vector.extract_strided_slice %37 {offsets = [0, 256], sizes = [8, 128], strides = [1, 1]} : vector<8x384xf32> to vector<8x128xf32>
    %45 = vector.shape_cast %44 : vector<8x128xf32> to vector<1x8x128xf32>
    %46 = arith.truncf %45 : vector<1x8x128xf32> to vector<1x8x128xbf16>
    "tpu.trace_start"() <{level = 10 : i32, message = "btc,bsc->bts"}> : () -> ()
    %cst_17 = arith.constant dense<0.000000e+00> : vector<1x8x8xf32>
    %47 = tpu.matmul %40, %43, %cst_17 {dimension_numbers = #tpu.dot_dimension_numbers<[2], [2], [1], [1], [0, 0, 0, 1, 1, 1], [0], [0]>} : vector<1x8x128xbf16>, vector<1x8x128xbf16>, vector<1x8x8xf32> -> vector<1x8x8xf32>
    "tpu.trace_stop"() : () -> ()
    %cst_18 = arith.constant dense<0xFF800000> : vector<1x8xf32>
    %48 = vector.multi_reduction <maximumf>, %47, %cst_18 [2] : vector<1x8x8xf32> to vector<1x8xf32>
    %49 = vector.shape_cast %48 : vector<1x8xf32> to vector<1x8x1xf32>
    %50 = vector.broadcast %49 : vector<1x8x1xf32> to vector<1x8x8xf32>
    %51 = arith.subf %47, %50 : vector<1x8x8xf32>
    %52 = math.exp %51 : vector<1x8x8xf32>
    %cst_19 = arith.constant dense<0.000000e+00> : vector<1x8xf32>
    %53 = vector.multi_reduction <add>, %52, %cst_19 [2] : vector<1x8x8xf32> to vector<1x8xf32>
    %54 = vector.shape_cast %53 : vector<1x8xf32> to vector<1x8x1xf32>
    %55 = tpu.reciprocal %54 {approx = true} : vector<1x8x1xf32> -> vector<1x8x1xf32>
    %56 = vector.broadcast %55 : vector<1x8x1xf32> to vector<1x8x8xf32>
    %57 = arith.mulf %52, %56 : vector<1x8x8xf32>
    %58 = arith.truncf %57 : vector<1x8x8xf32> to vector<1x8x8xbf16>
    "tpu.trace_start"() <{level = 10 : i32, message = "bts,bsc->btc"}> : () -> ()
    %cst_20 = arith.constant dense<0.000000e+00> : vector<1x8x128xf32>
    %59 = tpu.matmul %58, %46, %cst_20 {dimension_numbers = #tpu.dot_dimension_numbers<[2], [1], [1], [2], [0, 0, 0, 1, 1, 2], [0], [0]>} : vector<1x8x8xbf16>, vector<1x8x128xbf16>, vector<1x8x128xf32> -> vector<1x8x128xf32>
    "tpu.trace_stop"() : () -> ()
    %60 = vector.shape_cast %59 : vector<1x8x128xf32> to vector<8x128xf32>
    %61 = arith.truncf %60 : vector<8x128xf32> to vector<8x128xbf16>
    %c0_21 = arith.constant 0 : index
    %c0_22 = arith.constant 0 : index
    %62 = vector.load %arg6[%c0_21, %c0_22] : memref<128x128xbf16, #tpu.memory_space<vmem>>, vector<128x128xbf16>
    %cst_23 = arith.constant dense<0.000000e+00> : vector<8x128xf32>
    %63 = tpu.matmul %61, %62, %cst_23 {dimension_numbers = #tpu.dot_dimension_numbers<[1], [0], [0], [1], [0, 0, 1, 1], [], []>} : vector<8x128xbf16>, vector<128x128xbf16>, vector<8x128xf32> -> vector<8x128xf32>
    %c0_24 = arith.constant 0 : index
    %c0_25 = arith.constant 0 : index
    %64 = vector.load %arg7[%c0_24, %c0_25] : memref<1x128xf32, #tpu.memory_space<vmem>>, vector<1x128xf32>
    %65 = vector.broadcast %64 : vector<1x128xf32> to vector<8x128xf32>
    %66 = arith.addf %63, %65 : vector<8x128xf32>
    %67 = vector.shape_cast %66 : vector<8x128xf32> to vector<1x8x128xf32>
    %68 = arith.truncf %67 : vector<1x8x128xf32> to vector<1x8x128xbf16>
    %c0_26 = arith.constant 0 : index
    %c0_27 = arith.constant 0 : index
    %c0_28 = arith.constant 0 : index
    %69 = vector.load %arg8[%c0_26, %c0_27, %c0_28] : memref<1x8x128xbf16, #tpu.memory_space<vmem>>, vector<1x8x128xbf16>
    tpu.vector_store %arg8[%c0_26, %c0_27, %c0_28], %68 {strides = array<i32>} : memref<1x8x128xbf16, #tpu.memory_space<vmem>>, vector<1x8x128xbf16>,
    return
  }
  func.func @transform_0(%arg0: i32) -> (i32, i32, i32) {
    %c0_i32 = arith.constant 0 : i32
    %c0_i32_0 = arith.constant 0 : i32
    %c0_i32_1 = arith.constant 0 : i32
    return %arg0, %c0_i32, %c0_i32_0 : i32, i32, i32
  }
  func.func @transform_1(%arg0: i32) -> (i32, i32) {
    %c0_i32 = arith.constant 0 : i32
    %c0_i32_0 = arith.constant 0 : i32
    %c0_i32_1 = arith.constant 0 : i32
    return %c0_i32, %c0_i32_0 : i32, i32
  }
  func.func @transform_2(%arg0: i32) -> (i32, i32) {
    %c0_i32 = arith.constant 0 : i32
    %c0_i32_0 = arith.constant 0 : i32
    %c0_i32_1 = arith.constant 0 : i32
    return %c0_i32, %c0_i32_0 : i32, i32
  }
  func.func @transform_3(%arg0: i32) -> (i32, i32) {
    %c0_i32 = arith.constant 0 : i32
    %c0_i32_0 = arith.constant 0 : i32
    %c0_i32_1 = arith.constant 0 : i32
    return %c0_i32, %c0_i32_0 : i32, i32
  }
  func.func @transform_4(%arg0: i32) -> (i32, i32) {
    %c0_i32 = arith.constant 0 : i32
    %c0_i32_0 = arith.constant 0 : i32
    %c0_i32_1 = arith.constant 0 : i32
    return %c0_i32, %c0_i32_0 : i32, i32
  }
  func.func @transform_5(%arg0: i32) -> (i32, i32) {
    %c0_i32 = arith.constant 0 : i32
    %c0_i32_0 = arith.constant 0 : i32
    %c0_i32_1 = arith.constant 0 : i32
    return %c0_i32, %c0_i32_0 : i32, i32
  }
  func.func @transform_6(%arg0: i32) -> (i32, i32) {
    %c0_i32 = arith.constant 0 : i32
    %c0_i32_0 = arith.constant 0 : i32
    %c0_i32_1 = arith.constant 0 : i32
    return %c0_i32, %c0_i32_0 : i32, i32
  }
  func.func @transform_7(%arg0: i32) -> (i32, i32, i32) {
    %c0_i32 = arith.constant 0 : i32
    %c0_i32_0 = arith.constant 0 : i32
    %c0_i32_1 = arith.constant 0 : i32
    return %arg0, %c0_i32, %c0_i32_0 : i32, i32, i32
  }
}

</mosaic_0001>

<bundles_post_ra>
// kernel: tpu_custom_call.1
= control target key start
LH: loop header
LB: loop body
LE: loop exit
PB: predicated region body
PF: predicated region fallthrough
CT: control target
= control target key end

     0   :  { %s2667_s0 = inlined_call_operand.hbm [shape: bf16[2,8,768], index: 0, kind: input, shape index: {}]   ;;  %s2668_s1 = inlined_call_operand.hbm [shape: bf16[768,256], index: 1, kind: input, shape index: {}]   ;;  %s2669_s2 = inlined_call_operand.vmem [shape: f32[1,128], index: 2, kind: input, shape index: {}]   ;;  %s2670_s3 = inlined_call_operand.hbm [shape: bf16[128,384], index: 3, kind: input, shape index: {}]   ;;  %s2671_s4 = inlined_call_operand.vmem [shape: f32[1,384], index: 4, kind: input, shape index: {}]   ;;  %s2672_s5 = inlined_call_operand.hbm [shape: bf16[128,128], index: 5, kind: input, shape index: {}]   ;;  %s2673_s6 = inlined_call_operand.vmem [shape: f32[1,128], index: 6, kind: input, shape index: {}]   ;;  %s2674_s7 = inlined_call_operand.hbm [shape: bf16[2,8,128], index: 7, kind: output, shape index: {}]  }
   0x1   :  { %2679 = sst [smem:[#allocation15_spill]] %s2668_s1 }
   0x2   :  { %2680 = sst [smem:[#allocation16_spill]] %s2670_s3 }
   0x3   :  { %12 = vsyncpa [#allocation3], 0 }
   0x4   :  { %14 = vsyncpa [#allocation3 + $0x1], 0 }
   0x5   :  { %15 = vsyncpa [#allocation6], 0 }
   0x6   :  { %16 = vsyncpa [#allocation9], 0 }
   0x7   :  { %17 = vsyncpa [#allocation4], 0 }
   0x8   :  { %19 = vsyncpa [#allocation4 + $0x1], 0  ;;  %s2422_s24 = smov 0   ;;  %s2424_s25 = smov 0  }
   0x9   :  { %s2426_s26 = smov 0   ;;  %s2428_s27 = smov 0  }
   0xa LB: > { %s2443_s28 = sadd.s32 4294967295, %s2366_s27   ;;  %s1678_s29 = sadd.s32 4294967294, %s2366_s27   ;;  %s2366_s27 = sphi %s2428_s27, %s2702_s27   ;;  %s2362_s26 = sphi %s2426_s26, %s2701_s26   ;;  %s2358_s25 = sphi %s2424_s25, %s2700_s25   ;;  %s2354_s24 = sphi %s2422_s24, %s2699_s24  }
   0xb   : > { %p45_p0 = scmp.ne.s32.totalorder %s2358_s25, %s2354_s24  ;;  %p2675_p1 = scmp.eq.s32.totalorder %s2443_s28, 0 }
   0xc   : > { %p201_p3 = scmp.eq.s32.totalorder %s1678_s29, 1  ;;  %p1679_p5 = scmp.ge.s32.totalorder %s2366_s27, 1 }
   0xd   : > { %p2452_p4 = por %p2675_p1, %p45_p0  ;;  %p208_p7 = scmp.lt.s32.totalorder %s2366_s27, 3 }
   0xe   : > { %p2457_p6 = por %p201_p3, %p45_p0  ;;  %s2368_s10 = smov [#allocation5]  }
   0xf   : > { %s2681_s30 = scalar_select %p2452_p4, 1, 0 }
  0x10   : > { %s2682_s8 = scalar_select %p2457_p6, 1, 0 }
  0x11   : > { %p2462_p8 = pnand %p1679_p5, %p208_p7  ;;  %s220_s11 = sshll.u32 %s2368_s10, 4  ;;  %s221_s11 = int_to_ptr.vmem [resolvable:$true] %s220_s11 }
  0x12   : > { %s2369_s13 = smov [#allocation7]   ;;  %s2199_s15 = scalar_lea.vmem %s221_s11, 12288 }
  0x13   : > { %s2683_s9 = scalar_select %p2462_p8, 1, 0 }
  0x14   : > { %p1924_p9 = pneg %p2462_p8  ;;  %s236_s14 = sshll.u32 %s2369_s13, 4  ;;  %s237_s14 = int_to_ptr.vmem [resolvable:$true] %s236_s14 }
  0x15   : > { %p2200_p13 = scmp.ne.s32.totalorder %s221_s11, %s2199_s15  ;;  %p2207_p5 = scmp.lt.s32.totalorder %s221_s11, %s221_s11 }
  0x16   : > { %p2471_p11 = pnand %p1924_p9, %p2675_p1  ;;  %p2208_p7 = scmp.lt.s32.totalorder %s2199_s15, %s2199_s15 }
  0x18   : > { %p2190_p12 = pneg %p2471_p11  ;;  %p2209_p10 = por %p2208_p7, %p2207_p5 }
  0x1a   : > { %p2202_p0 = pnand %p2200_p13, %p2190_p12 }
  0x1c   : > { %p2203_p3 = pneg %p2202_p0 }
  0x1e   : > { %p2210_p9 = pnand %p2209_p10, %p2203_p3 }
  0x20   : > { %2213 = shalt.err (!%p2210_p9)
}
  0x21   : > { %s2370_s16 = smov 128   ;;  %s2371_s17 = smov 8  }
  0x22   : > { %s2685_s1 = sld [smem:[#allocation15_spill]]  ;;  %s2225_s20 = scalar_lea.vmem %s237_s14, 3072 }
  0x23   : > { %p2226_p1 = scmp.ne.s32.totalorder %s237_s14, %s2225_s20  ;;  %p2233_p2 = scmp.lt.s32.totalorder %s237_s14, %s237_s14 }
  0x24   : > { %p2234_p6 = scmp.lt.s32.totalorder %s2225_s20, %s2225_s20 }
  0x25   : > { %p2228_p13 = pnand %p2226_p1, %p2190_p12 }
  0x26   : > { %p2235_p5 = por %p2234_p6, %p2233_p2 }
  0x27   : > { %p2229_p0 = pneg %p2228_p13 }
  0x28   : > { %1927 = dma.hbm_to_vmem [thread:$0]  (!%p2471_p11), %s2685_s1, 12288, %s221_s11, [#allocation6], %s2370_s16, %s2370_s16, %s2371_s17  }
  0x29   : > { %p2236_p10 = pnand %p2235_p5, %p2229_p0 }
  0x2b   : > { %2239 = shalt.err (!%p2236_p10)
}
  0x2c   : > { %s2372_s21 = smov 192   ;;  %s2373_s22 = smov 12  }
  0x2d   : > { %s2686_s3 = sld [smem:[#allocation16_spill]]  ;;  %s2374_s10 = smov [#allocation8]  }
  0x2e   : > { %s252_s11 = sshll.u32 %s2374_s10, 4  ;;  %s253_s11 = int_to_ptr.vmem [resolvable:$true] %s252_s11 }
  0x2f   : > { %s2251_s13 = scalar_lea.vmem %s253_s11, 1024  ;;  %p2259_p6 = scmp.lt.s32.totalorder %s253_s11, %s253_s11 }
  0x30   : > { %p2252_p1 = scmp.ne.s32.totalorder %s253_s11, %s2251_s13  ;;  %p2260_p7 = scmp.lt.s32.totalorder %s2251_s13, %s2251_s13 }
  0x32   : > { %p2254_p3 = pnand %p2252_p1, %p2190_p12  ;;  %p2261_p9 = por %p2260_p7, %p2259_p6 }
  0x33   : > { %1930 = dma.hbm_to_vmem [thread:$0]  (!%p2471_p11), %s2686_s3, 3072, %s237_s14, [#allocation6], %s2372_s21, %s2372_s21, %s2373_s22  }
  0x34   : > { %p2255_p2 = pneg %p2254_p3 }
  0x36   : > { %p2262_p13 = pnand %p2261_p9, %p2255_p2 }
  0x38   : > { %2265 = shalt.err (!%p2262_p13)
}
  0x39   : > { %s2375_s15 = smov 64   ;;  %s2376_s14 = smov 4  }
  0x3a   : > { %1933 = dma.hbm_to_vmem [thread:$0]  (!%p2471_p11), %s2672_s5, 1024, %s253_s11, [#allocation9], %s2375_s15, %s2375_s15, %s2376_s14  }
  0x3b   : > { %s2502_s18 = sadd.s32 1, %s2366_s27   ;;  %s32_s20 = sadd.s32 1, %s2362_s26 }
  0x3c   : > { %s29_s19 = ssub.s32 %s2366_s27, %s2502_s18  ;;  %p39_p0 = scmp.ne.s32.totalorder %s2362_s26, %s2358_s25 }
  0x3d   : > { %p30_p12 = scmp.eq.s32.totalorder %s29_s19, 0  ;;  %p40_p5 = scmp.eq.s32.totalorder %s2366_s27, 0 }
  0x3e   : > { %p1945_p10 = scmp.lt.s32.totalorder %s2366_s27, 2  ;;  %p2687_p3 = scmp.eq.s32.totalorder %s2443_s28, 1 }
  0x3f   : > { %s2512_s21 = scalar_select %p30_p12, %s2362_s26, %s32_s20  }
  0x40   : > { %p41_p1 = por %p40_p5, %p39_p0  ;;  %p2516_p2 = por %p2687_p3, %p39_p0 }
  0x41   : > { %s269_s12 = sand.u32 1, %s2362_s26   ;;  %s1906_s23 = smul.u32 384, %s2366_s27 }
  0x42   : > { %s2688_s22 = scalar_select %p2516_p2, 1, 0 }
  0x43   : > { %s1905_s29 = smul.u32 24, %s269_s12  ;;  %p2522_p11 = pnand %p1945_p10, %p41_p1 }
  0x44   : > { %s2529_s15 = scalar_lea.hbm %s2667_s0, %s1906_s23  ;;  %s270_s17 = scalar_lea.sflag [#allocation3], %s269_s12 }
  0x45   : > { %s273_s14 = scalar_lea.vmem [#allocation2], %s1905_s29  ;;  %s2266_s19 = scalar_lea.hbm %s2529_s15, 384 }
  0x46   : > { %s281_s16 = sshll.u32 %s273_s14, 4  ;;  %p2267_p6 = scmp.ne.s32.totalorder %s2529_s15, %s2266_s19  ;;  %s282_s16 = int_to_ptr.vmem [resolvable:$true] %s281_s16 }
  0x47   : > { %p2268_p7 = pneg %p2522_p11  ;;  %s2271_s11 = scalar_lea.hbm %s2667_s0, 768 }
  0x48   : > { %p2272_p12 = scmp.lt.s32.totalorder %s2529_s15, %s2667_s0  ;;  %p2273_p0 = scmp.lt.s32.totalorder %s2271_s11, %s2266_s19 }
  0x49   : > { %p2269_p9 = pnand %p2268_p7, %p2267_p6 }
  0x4a   : > { %p2274_p5 = por %p2273_p0, %p2272_p12 }
  0x4b   : > { %p2270_p13 = pneg %p2269_p9 }
  0x4d   : > { %p2275_p10 = pnand %p2274_p5, %p2270_p13 }
  0x4f   : > { %2278 = shalt.err (!%p2275_p10)
}
  0x50   : > { %s2279_s29 = scalar_lea.vmem %s282_s16, 384  ;;  %s2377_s12 = smov [#allocation2]  }
  0x51   : > { %p2280_p1 = scmp.ne.s32.totalorder %s282_s16, %s2279_s29  ;;  %s2284_s14 = sshll.u32 %s2377_s12, 4  ;;  %s2285_s14 = int_to_ptr.vmem [resolvable:$false] %s2284_s14 }
  0x52   : > { %s2286_s3 = scalar_lea.vmem %s2285_s14, 768  ;;  %p2287_p6 = scmp.lt.s32.totalorder %s282_s16, %s2285_s14 }
  0x53   : > { %p2282_p3 = pnand %p2280_p1, %p2268_p7  ;;  %p2288_p9 = scmp.lt.s32.totalorder %s2286_s3, %s2279_s29 }
  0x55   : > { %p2283_p2 = pneg %p2282_p3  ;;  %p2289_p4 = por %p2288_p9, %p2287_p6 }
  0x57   : > { %p2290_p8 = pnand %p2289_p4, %p2283_p2 }
  0x59   : > { %2293 = shalt.err (!%p2290_p8)
}
  0x5a   : > { %1937 = dma.hbm_to_vmem [thread:$0]  (!%p2522_p11), %s2529_s15, 384, %s282_s16, %s270_s17  }
  0x5b   : > { %p2690_p13 = scmp.ne.s32.totalorder %s2683_s9, 0 }
  0x5c   : > { %s2548_s1 = sand.u32 (!%p2690_p13), 1, %s2358_s25   ;;  %p2691_p7 = scmp.ne.s32.totalorder (!%p2690_p13), %s2681_s30, 0 }
  0x5d   : > { %290 = sbr.rel (%p2690_p13) target bundleno = 1557 (0x615), region = 48  ;;  %s293_s20 = scalar_lea.sflag (!%p2690_p13), [#allocation3], %s2548_s1 }
  0x5e   : > { %s1907_s19 = smul.u32 (!%p2690_p13), 24, %s2548_s1 }
  0x60   : > { %s2552_s11 = scalar_lea.vmem (!%p2690_p13), [#allocation2], %s1907_s19 }
  0x62   : > { %2337 = dma.done.wait (%p2691_p7), %s293_s20, 384  }
  0x63   : > { %2339 = vsyncadd (%p2691_p7), %s293_s20, 4294966912  ;;  %p2692_p4 = scmp.eq.s32.totalorder %s2443_s28, 0 }
  0x65   : > { %2341 = dma.done.wait (%p2692_p4), [#allocation6], 15360   ;;  %p2693_p8 = pmov %p2692_p4 }
  0x66   : > { %p2694_p2 = pmov %p2692_p4 }
  0x67   : > { %2343 = vsyncadd (%p2693_p8), [#allocation6], 4294951936 }
  0x68   : > { %2345 = dma.done.wait (%p2694_p2), [#allocation9], 1024   ;;  %p2695_p11 = pmov %p2694_p2 }
  0x69   : > { %v1994_v0 = vld [vmem:[#allocation5 + $0x74] ss:$8 sps:$4 sm:$0xff]   ;;  %v1998_v2 = vld [vmem:[#allocation5 + $0x70] ss:$8 sps:$4 sm:$0xff]   ;;  %v2000_v4 = vld [vmem:[#allocation5 + $0x64] ss:$8 sps:$4 sm:$0xff]  }
  0x6a   : > { %2347 = vsyncadd (%p2695_p11), [#allocation9], 4294966272  ;;  %v1996_v1 = vld [vmem:[#allocation5 + $0x174] ss:$8 sps:$4 sm:$0xff]   ;;  %940 = vmatprep.subr.bf16.mxu0 %v1994_v0  ;;  %v1999_v3 = vld [vmem:[#allocation5 + $0x170] ss:$8 sps:$4 sm:$0xff]  }
  0x6b   : > { %981 = vmatprep.subr.bf16.mxu1 %v1996_v1  ;;  %941 = vmatpush1.bf16.msra.mxu0 %v1998_v2  ;;  %v2002_v5 = vld [vmem:[#allocation5 + $0x164] ss:$8 sps:$4 sm:$0xff]   ;;  %v2004_v6 = vld [vmem:[#allocation5 + $0x60] ss:$8 sps:$4 sm:$0xff]   ;;  %v2006_v8 = vld [vmem:[#allocation5 + $0x54] ss:$8 sps:$4 sm:$0xff]  }
  0x6c   : > { %982 = vmatpush1.bf16.msra.mxu1 %v1999_v3  ;;  %942 = vmatprep.subr.bf16.mxu0 %v2000_v4  ;;  %v2005_v7 = vld [vmem:[#allocation5 + $0x160] ss:$8 sps:$4 sm:$0xff]   ;;  %v2008_v9 = vld [vmem:[#allocation5 + $0x154] ss:$8 sps:$4 sm:$0xff]   ;;  %v2010_v10 = vld [vmem:[#allocation5 + $0x50] ss:$8 sps:$4 sm:$0xff]  }
  0x6d   : > { %983 = vmatprep.subr.bf16.mxu1 %v2002_v5  ;;  %v2011_v11 = vld [vmem:[#allocation5 + $0x150] ss:$8 sps:$4 sm:$0xff]   ;;  %v2012_v12 = vld [vmem:[#allocation5 + $0x44] ss:$8 sps:$4 sm:$0xff]   ;;  %v2016_v14 = vld [vmem:[#allocation5 + $0x40] ss:$8 sps:$4 sm:$0xff]  }
  0x6e   : > { %v2014_v13 = vld [vmem:[#allocation5 + $0x144] ss:$8 sps:$4 sm:$0xff]   ;;  %v2017_v15 = vld [vmem:[#allocation5 + $0x140] ss:$8 sps:$4 sm:$0xff]   ;;  %v2018_v16 = vld [vmem:[#allocation5 + $0x34] ss:$8 sps:$4 sm:$0xff]  }
  0x6f   : > { %943 = vmatpush1.bf16.msra.mxu0 %v2004_v6  ;;  %v2020_v17 = vld [vmem:[#allocation5 + $0x134] ss:$8 sps:$4 sm:$0xff]   ;;  %v2022_v18 = vld [vmem:[#allocation5 + $0x30] ss:$8 sps:$4 sm:$0xff]   ;;  %v2024_v20 = vld [vmem:[#allocation5 + $0x24] ss:$8 sps:$4 sm:$0xff]  }
  0x70   : > { %984 = vmatpush1.bf16.msra.mxu1 %v2005_v7  ;;  %944 = vmatprep.subr.bf16.mxu0 %v2006_v8  ;;  %v2023_v19 = vld [vmem:[#allocation5 + $0x130] ss:$8 sps:$4 sm:$0xff]   ;;  %v2026_v21 = vld [vmem:[#allocation5 + $0x124] ss:$8 sps:$4 sm:$0xff]   ;;  %v2028_v22 = vld [vmem:[#allocation5 + $0x20] ss:$8 sps:$4 sm:$0xff]  }
  0x71   : > { %985 = vmatprep.subr.bf16.mxu1 %v2008_v9  ;;  %v2029_v23 = vld [vmem:[#allocation5 + $0x120] ss:$8 sps:$4 sm:$0xff]   ;;  %v2030_v24 = vld [vmem:[#allocation5 + $0x14] ss:$8 sps:$4 sm:$0xff]   ;;  %v2034_v26 = vld [vmem:[#allocation5 + $0x10] ss:$8 sps:$4 sm:$0xff]  }
  0x72   : > { %v2032_v25 = vld [vmem:[#allocation5 + $0x114] ss:$8 sps:$4 sm:$0xff]   ;;  %v2035_v27 = vld [vmem:[#allocation5 + $0x110] ss:$8 sps:$4 sm:$0xff]   ;;  %v2036_v28 = vld [vmem:[#allocation5 + $0x4] ss:$8 sps:$4 sm:$0xff]  }
  0x73   : > { %945 = vmatpush1.bf16.msra.mxu0 %v2010_v10  ;;  %v2038_v29 = vld [vmem:[#allocation5 + $0x104] ss:$8 sps:$4 sm:$0xff]   ;;  %v2040_v30 = vld [vmem:[#allocation5] ss:$8 sps:$4 sm:$0xff]   ;;  %v2042_v32 = vld [vmem:[#allocation5 + $0xf4] ss:$8 sps:$4 sm:$0xff]  }
  0x74   : > { %986 = vmatpush1.bf16.msra.mxu1 %v2011_v11  ;;  %946 = vmatprep.subr.bf16.mxu0 %v2012_v12  ;;  %v2041_v31 = vld [vmem:[#allocation5 + $0x100] ss:$8 sps:$4 sm:$0xff]   ;;  %v2044_v33 = vld [vmem:[#allocation5 + $0x1f4] ss:$8 sps:$4 sm:$0xff]   ;;  %v2046_v34 = vld [vmem:[#allocation5 + $0xf0] ss:$8 sps:$4 sm:$0xff]  }
  0x75   : > { %987 = vmatprep.subr.bf16.mxu1 %v2014_v13  ;;  %v2047_v35 = vld [vmem:[#allocation5 + $0x1f0] ss:$8 sps:$4 sm:$0xff]   ;;  %v2048_v36 = vld [vmem:[#allocation5 + $0xe4] ss:$8 sps:$4 sm:$0xff]   ;;  %v2052_v38 = vld [vmem:[#allocation5 + $0xe0] ss:$8 sps:$4 sm:$0xff]  }
  0x76   : > { %v2050_v37 = vld [vmem:[#allocation5 + $0x1e4] ss:$8 sps:$4 sm:$0xff]   ;;  %v2053_v39 = vld [vmem:[#allocation5 + $0x1e0] ss:$8 sps:$4 sm:$0xff]   ;;  %v2054_v40 = vld [vmem:[#allocation5 + $0xd4] ss:$8 sps:$4 sm:$0xff]  }
  0x77   : > { %947 = vmatpush1.bf16.msra.mxu0 %v2016_v14  ;;  %v2056_v41 = vld [vmem:[#allocation5 + $0x1d4] ss:$8 sps:$4 sm:$0xff]   ;;  %v2058_v42 = vld [vmem:[#allocation5 + $0xd0] ss:$8 sps:$4 sm:$0xff]   ;;  %v2060_v44 = vld [vmem:[#allocation5 + $0xc4] ss:$8 sps:$4 sm:$0xff]  }
  0x78   : > { %988 = vmatpush1.bf16.msra.mxu1 %v2017_v15  ;;  %948 = vmatprep.subr.bf16.mxu0 %v2018_v16  ;;  %v2059_v43 = vld [vmem:[#allocation5 + $0x1d0] ss:$8 sps:$4 sm:$0xff]   ;;  %v2062_v45 = vld [vmem:[#allocation5 + $0x1c4] ss:$8 sps:$4 sm:$0xff]   ;;  %v2064_v49 = vld [vmem:[#allocation5 + $0xc0] ss:$8 sps:$4 sm:$0xff]  }
  0x79   : > { %989 = vmatprep.subr.bf16.mxu1 %v2020_v17  ;;  %v340_v46 = vld [vmem:[%s2552_s11] sm:$0xff]  ;;  %v341_v48 = vld [vmem:[%s2552_s11 + $0x8] sm:$0xff]  ;;  %v2569_v9 = vld [vmem:[%s2552_s11 + $0x10] sm:$0xff]  ;;  %vm2380_vm0 = vmmov 0   ;;  %vm1407_vm2 = vcmask 1043456   ;;  %vm1391_vm3 = vcmask 64512  }
  0x7a   : > { %v1691_v47 = vcombine.high %v340_v46, %v340_v46  ;;  %v2065_v50 = vld [vmem:[#allocation5 + $0x1c0] ss:$8 sps:$4 sm:$0xff]   ;;  %v1693_v51 = vcombine.high %v341_v48, %v341_v48  ;;  %v2066_v52 = vld [vmem:[#allocation5 + $0xb4] ss:$8 sps:$4 sm:$0xff]   ;;  %v2070_v54 = vld [vmem:[#allocation5 + $0xb0] ss:$8 sps:$4 sm:$0xff]   ;;  %v1690_v5 = vcombine.low %v340_v46, %v340_v46  ;;  %v1692_v6 = vcombine.low %v341_v48, %v341_v48 }
  0x7b   : > { %949 = vmatpush1.bf16.msra.mxu0 %v2022_v18  ;;  %v2068_v53 = vld [vmem:[#allocation5 + $0x1b4] ss:$8 sps:$4 sm:$0xff]   ;;  %v2071_v55 = vld [vmem:[#allocation5 + $0x1b0] ss:$8 sps:$4 sm:$0xff]   ;;  %v2072_v56 = vld [vmem:[#allocation5 + $0xa4] ss:$8 sps:$4 sm:$0xff]   ;;  %v1695_v10 = vcombine.high %v2569_v9, %v2569_v9 }
  0x7c   : > { %990 = vmatpush1.bf16.msra.mxu1 %v2023_v19  ;;  %950 = vmatprep.subr.bf16.mxu0 %v2024_v20  ;;  %v2074_v57 = vld [vmem:[#allocation5 + $0x1a4] ss:$8 sps:$4 sm:$0xff]   ;;  %v2076_v58 = vld [vmem:[#allocation5 + $0xa0] ss:$8 sps:$4 sm:$0xff]   ;;  %v2078_v60 = vld [vmem:[#allocation5 + $0x94] ss:$8 sps:$4 sm:$0xff]  }
  0x7d   : > { %991 = vmatprep.subr.bf16.mxu1 %v2026_v21  ;;  %972 = vmatprep.mubr.bf16.mxu0 %v1691_v47  ;;  %v2077_v59 = vld [vmem:[#allocation5 + $0x1a0] ss:$8 sps:$4 sm:$0xff]   ;;  %v2080_v61 = vld [vmem:[#allocation5 + $0x194] ss:$8 sps:$4 sm:$0xff]   ;;  %v2082_v62 = vld [vmem:[#allocation5 + $0x90] ss:$8 sps:$4 sm:$0xff]  }
  0x7e   : > { %1013 = vmatprep.mubr.bf16.mxu1 %v1693_v51  ;;  %v2083_v63 = vld [vmem:[#allocation5 + $0x190] ss:$8 sps:$4 sm:$0xff]   ;;  %v2084_v0 = vld [vmem:[#allocation5 + $0x84] ss:$8 sps:$4 sm:$0xff]   ;;  %v2088_v2 = vld [vmem:[#allocation5 + $0x80] ss:$8 sps:$4 sm:$0xff]  }
  0x7f   : > { %951 = vmatpush1.bf16.msra.mxu0 %v2028_v22  ;;  %v2086_v1 = vld [vmem:[#allocation5 + $0x184] ss:$8 sps:$4 sm:$0xff]   ;;  %v2089_v3 = vld [vmem:[#allocation5 + $0x180] ss:$8 sps:$4 sm:$0xff]   ;;  %v2096_v4 = vld [vmem:[#allocation5 + $0x274] ss:$8 sps:$4 sm:$0xff]  }
  0x80   : > { %992 = vmatpush1.bf16.msra.mxu1 %v2029_v23  ;;  %952 = vmatprep.subr.bf16.mxu0 %v2030_v24  ;;  %v2094_v7 = vld [vmem:[#allocation5 + $0x270] ss:$8 sps:$4 sm:$0xff]   ;;  %v2099_v8 = vld [vmem:[#allocation5 + $0x264] ss:$8 sps:$4 sm:$0xff]   ;;  %v2097_v11 = vld [vmem:[#allocation5 + $0x260] ss:$8 sps:$4 sm:$0xff]  }
  0x81   : > { %993 = vmatprep.subr.bf16.mxu1 %v2032_v25  ;;  %v2102_v12 = vld [vmem:[#allocation5 + $0x254] ss:$8 sps:$4 sm:$0xff]   ;;  %v2100_v13 = vld [vmem:[#allocation5 + $0x250] ss:$8 sps:$4 sm:$0xff]   ;;  %v2105_v14 = vld [vmem:[#allocation5 + $0x244] ss:$8 sps:$4 sm:$0xff]  }
  0x82   : > { %v2103_v15 = vld [vmem:[#allocation5 + $0x240] ss:$8 sps:$4 sm:$0xff]   ;;  %v2108_v16 = vld [vmem:[#allocation5 + $0x234] ss:$8 sps:$4 sm:$0xff]   ;;  %v2106_v17 = vld [vmem:[#allocation5 + $0x230] ss:$8 sps:$4 sm:$0xff]  }
  0x83   : > { %953 = vmatpush1.bf16.msra.mxu0 %v2034_v26  ;;  %v2111_v18 = vld [vmem:[#allocation5 + $0x224] ss:$8 sps:$4 sm:$0xff]   ;;  %v2109_v19 = vld [vmem:[#allocation5 + $0x220] ss:$8 sps:$4 sm:$0xff]   ;;  %v2114_v20 = vld [vmem:[#allocation5 + $0x214] ss:$8 sps:$4 sm:$0xff]  }
  0x84   : > { %994 = vmatpush1.bf16.msra.mxu1 %v2035_v27  ;;  %954 = vmatprep.subr.bf16.mxu0 %v2036_v28  ;;  %v2112_v21 = vld [vmem:[#allocation5 + $0x210] ss:$8 sps:$4 sm:$0xff]   ;;  %v2117_v22 = vld [vmem:[#allocation5 + $0x204] ss:$8 sps:$4 sm:$0xff]   ;;  %v2115_v23 = vld [vmem:[#allocation5 + $0x200] ss:$8 sps:$4 sm:$0xff]  }
  0x85   : > { %995 = vmatprep.subr.bf16.mxu1 %v2038_v29  ;;  %v2120_v24 = vld [vmem:[#allocation5 + $0x2f4] ss:$8 sps:$4 sm:$0xff]   ;;  %v2118_v25 = vld [vmem:[#allocation5 + $0x2f0] ss:$8 sps:$4 sm:$0xff]   ;;  %v2123_v26 = vld [vmem:[#allocation5 + $0x2e4] ss:$8 sps:$4 sm:$0xff]  }
  0x86   : > { %v2121_v27 = vld [vmem:[#allocation5 + $0x2e0] ss:$8 sps:$4 sm:$0xff]   ;;  %v2126_v28 = vld [vmem:[#allocation5 + $0x2d4] ss:$8 sps:$4 sm:$0xff]   ;;  %v2124_v29 = vld [vmem:[#allocation5 + $0x2d0] ss:$8 sps:$4 sm:$0xff]  }
  0x87   : > { %955 = vmatpush1.bf16.msra.mxu0 %v2040_v30  ;;  %v2129_v30 = vld [vmem:[#allocation5 + $0x2c4] ss:$8 sps:$4 sm:$0xff]   ;;  %v2161_v51 = vld [vmem:[#allocation7 + $0x34] ss:$12 sps:$4 sm:$0xff]   ;;  %s1689_s15 = sshll.u32 %s2548_s1, 2  ;;  %s1828_s13 = sshll.u32 %s2443_s28, 6 }
  0x88   : > { %996 = vmatpush1.bf16.msra.mxu1 %v2041_v31  ;;  %956 = vmatprep.subr.bf16.mxu0 %v2042_v32  ;;  %v2127_v31 = vld [vmem:[#allocation5 + $0x2c0] ss:$8 sps:$4 sm:$0xff]   ;;  %v2132_v32 = vld [vmem:[#allocation5 + $0x2b4] ss:$8 sps:$4 sm:$0xff]   ;;  %v2150_v46 = vld [vmem:[#allocation7 + $0x78] ss:$12 sps:$4 sm:$0xff]   ;;  %s2624_s19 = scalar_lea.hbm %s2674_s7, %s1828_s13 }
  0x89   : > { %997 = vmatprep.subr.bf16.mxu1 %v2044_v33  ;;  %v2130_v33 = vld [vmem:[#allocation5 + $0x2b0] ss:$8 sps:$4 sm:$0xff]   ;;  %v2153_v48 = vld [vmem:[#allocation7 + $0x60] ss:$12 sps:$4 sm:$0xff]   ;;  %s338_s23 = scalar_lea.vmem [#allocation10], %s1689_s15  ;;  %s1566_s20 = scalar_lea.sflag [#allocation4], %s2548_s1 }
  0x8a   : > { %v2155_v47 = vld [vmem:[#allocation7 + $0x64] ss:$12 sps:$4 sm:$0xff]   ;;  %s1579_s29 = sshll.u32 %s338_s23, 4  ;;  %p2696_p0 = scmp.ne.s32.totalorder %s2688_s22, 0  ;;  %s2626_s29 = int_to_ptr.vmem [resolvable:$true] %s1579_s29 }
  0x8b   : > { %957 = vmatpush2.bf16.msra.mxu0 %v2046_v34  ;;  %v2135_v34 = vld [vmem:[#allocation5 + $0x2a4] ss:$8 sps:$4 sm:$0xff]   ;;  %s2294_s28 = scalar_lea.vmem %s2626_s29, 64  ;;  %s2381_s11 = smov [#allocation10]  }
  0x8c   : > { %998 = vmatpush2.bf16.msra.mxu1 %v2047_v35  ;;  %958 = vmatprep.subr.bf16.mxu0 %v2048_v36  ;;  %v2133_v35 = vld [vmem:[#allocation5 + $0x2a0] ss:$8 sps:$4 sm:$0xff]   ;;  %v2138_v36 = vld [vmem:[#allocation5 + $0x294] ss:$8 sps:$4 sm:$0xff]   ;;  %p2295_p12 = scmp.ne.s32.totalorder %s2626_s29, %s2294_s28  ;;  %s2298_s3 = sshll.u32 %s2381_s11, 4  ;;  %s2299_s3 = int_to_ptr.vmem [resolvable:$false] %s2298_s3 }
  0x8d   : > { %999 = vmatprep.subr.bf16.mxu1 %v2050_v37  ;;  %v2136_v37 = vld [vmem:[#allocation5 + $0x290] ss:$8 sps:$4 sm:$0xff]   ;;  %s2300_s30 = scalar_lea.vmem %s2299_s3, 128  ;;  %p2301_p1 = scmp.lt.s32.totalorder %s2626_s29, %s2299_s3 }
  0x8e   : > { %p2296_p5 = pnand %p2295_p12, %p2696_p0  ;;  %p2302_p3 = scmp.lt.s32.totalorder %s2300_s30, %s2294_s28 }
  0x8f   : > { %959 = vmatpush2.bf16.msra.mxu0 %v2052_v38  ;;  %v2141_v38 = vld [vmem:[#allocation5 + $0x284] ss:$8 sps:$4 sm:$0xff]  }
  0x90   : > { %1000 = vmatpush2.bf16.msra.mxu1 %v2053_v39  ;;  %960 = vmatprep.subr.bf16.mxu0 %v2054_v40  ;;  %v2139_v39 = vld [vmem:[#allocation5 + $0x280] ss:$8 sps:$4 sm:$0xff]   ;;  %v1694_v40 = vcombine.low %v2569_v9, %v2569_v9  ;;  %p2297_p10 = pneg %p2296_p5  ;;  %p2303_p6 = por %p2302_p3, %p2301_p1 }
  0x91   : > { %1001 = vmatprep.subr.bf16.mxu1 %v2056_v41  ;;  %v2144_v41 = vld [vmem:[#allocation7 + $0xa8] ss:$12 sps:$4 sm:$0xff]  }
  0x92   : > { %p2304_p9 = pnand %p2303_p6, %p2297_p10 }
  0x93   : > { %961 = vmatpush2.bf16.msra.mxu0 %v2058_v42  ;;  %v2146_v42 = vld [vmem:[#allocation7 + $0xac] ss:$12 sps:$4 sm:$0xff]  }
  0x94   : > { %1002 = vmatpush2.bf16.msra.mxu1 %v2059_v43  ;;  %962 = vmatprep.subr.bf16.mxu0 %v2060_v44  ;;  %v2149_v43 = vld [vmem:[#allocation7 + $0x94] ss:$12 sps:$4 sm:$0xff]   ;;  %v2147_v44 = vld [vmem:[#allocation7 + $0x90] ss:$12 sps:$4 sm:$0xff]  }
  0x95   : > { %1003 = vmatprep.subr.bf16.mxu1 %v2062_v45  ;;  %v2152_v45 = vld [vmem:[#allocation7 + $0x7c] ss:$12 sps:$4 sm:$0xff]  }
  0x97   : > { %963 = vmatpush2.bf16.msra.mxu0 %v2064_v49  ;;  %v2158_v49 = vld [vmem:[#allocation7 + $0x4c] ss:$12 sps:$4 sm:$0xff]  }
  0x98   : > { %1004 = vmatpush2.bf16.msra.mxu1 %v2065_v50  ;;  %964 = vmatprep.subr.bf16.mxu0 %v2066_v52  ;;  %v2156_v50 = vld [vmem:[#allocation7 + $0x48] ss:$12 sps:$4 sm:$0xff]   ;;  %v2159_v52 = vld [vmem:[#allocation7 + $0x30] ss:$12 sps:$4 sm:$0xff]  }
  0x99   : > { %1005 = vmatprep.subr.bf16.mxu1 %v2068_v53  ;;  %v2164_v53 = vld [vmem:[#allocation7 + $0x1c] ss:$12 sps:$4 sm:$0xff]  }
  0x9b   : > { %965 = vmatpush2.bf16.msra.mxu0 %v2070_v54  ;;  %v2162_v54 = vld [vmem:[#allocation7 + $0x18] ss:$12 sps:$4 sm:$0xff]  }
  0x9c   : > { %1006 = vmatpush2.bf16.msra.mxu1 %v2071_v55  ;;  %966 = vmatprep.subr.bf16.mxu0 %v2072_v56  ;;  %v2167_v55 = vld [vmem:[#allocation7 + $0x4] ss:$12 sps:$4 sm:$0xff]   ;;  %v2165_v56 = vld [vmem:[#allocation7] ss:$12 sps:$4 sm:$0xff]  }
  0x9d   : > { %1007 = vmatprep.subr.bf16.mxu1 %v2074_v57  ;;  %v2378_v57 = vmov 0  }
  0x9f   : > { %967 = vmatpush2.bf16.msra.mxu0 %v2076_v58  ;;  %v2379_v58 = vmov 0.0  }
  0xa0   : > { %1008 = vmatpush2.bf16.msra.mxu1 %v2077_v59  ;;  %968 = vmatprep.subr.bf16.mxu0 %v2078_v60 }
  0xa1   : > { %1009 = vmatprep.subr.bf16.mxu1 %v2080_v61 }
  0xa3   : > { %969 = vmatpush2.bf16.msra.mxu0 %v2082_v62 }
  0xa4   : > { %1010 = vmatpush2.bf16.msra.mxu1 %v2083_v63  ;;  %970 = vmatprep.subr.bf16.mxu0 %v2084_v0 }
  0xa5   : > { %1011 = vmatprep.subr.bf16.mxu1 %v2086_v1 }
  0xa7   : > { %971 = vmatpush2.bf16.msra.mxu0 %v2088_v2 }
  0xa8   : > { %1012 = vmatpush2.bf16.msra.mxu1 %v2089_v3  ;;  %1022 = vmatprep.subr.bf16.mxu0 %v2096_v4  ;;  %v1064_v3 = vlaneseq }
  0xa9   : > { %1267 = vmatprep.subr.bf16.mxu1 %v2146_v42 }
  0xaa   : > { %973 = vmatmul.mubr.bf16.vlgmr.msra.gmra.mxu0 %v1690_v5  ;;  %v2579_v4 = vshrl.u32 %v1064_v3, 7  ;;  %v2182_v3 = vld [vmem:[#allocation8 + $0x8] sm:$0xff]  }
  0xab   : > { %1014 = vmatmul.mubr.bf16.vlgmr.msra.gmra.mxu1 %v1692_v6  ;;  %1023 = vmatpush1.bf16.msra.mxu0 %v2094_v7 }
  0xac   : > { %1054 = vmatprep.mubr.bf16.mxu0 %v1695_v10  ;;  %1024 = vmatprep.subr.bf16.mxu0 %v2099_v8  ;;  %v1070_v5 = vand.u32 7, %v2579_v4 }
  0xad   : > { %1268 = vmatpush1.bf16.msra.mxu1 %v2144_v41  ;;  %1299 = vmatprep.mubr.bf16.mxu1 %v2378_v57  ;;  %v1134_v41 = vsub.s32 2, %v2579_v4 }
  0xae   : > { %1269 = vmatprep.subr.bf16.mxu1 %v2149_v43  ;;  %vm1078_vm1 = vcmp.eq.s32.totalorder %v1070_v5, 0 }
  0xaf   : > { %1025 = vmatpush1.bf16.msra.mxu0 %v2097_v11 }
  0xb0   : > { %1026 = vmatprep.subr.bf16.mxu0 %v2102_v12 }
  0xb1   : > { %1270 = vmatpush1.bf16.msra.mxu1 %v2147_v44 }
  0xb2   : > { %1271 = vmatprep.subr.bf16.mxu1 %v2152_v45 }
  0xb3   : > { %1027 = vmatpush1.bf16.msra.mxu0 %v2100_v13 }
  0xb4   : > { %1028 = vmatprep.subr.bf16.mxu0 %v2105_v14 }
  0xb5   : > { %1272 = vmatpush1.bf16.msra.mxu1 %v2150_v46 }
  0xb6   : > { %1273 = vmatprep.subr.bf16.mxu1 %v2155_v47 }
  0xb7   : > { %1029 = vmatpush1.bf16.msra.mxu0 %v2103_v15  ;;  %v1792_v15 = vld [vmem:[%s2669_s2] ss:$0 sm:$0xff] }
  0xb8   : > { %1030 = vmatprep.subr.bf16.mxu0 %v2108_v16 }
  0xb9   : > { %1274 = vmatpush1.bf16.msra.mxu1 %v2153_v48 }
  0xba   : > { %1275 = vmatprep.subr.bf16.mxu1 %v2158_v49 }
  0xbb   : > { %1031 = vmatpush1.bf16.msra.mxu0 %v2106_v17 }
  0xbc   : > { %1032 = vmatprep.subr.bf16.mxu0 %v2111_v18 }
  0xbd   : > { %1276 = vmatpush1.bf16.msra.mxu1 %v2156_v50 }
  0xbe   : > { %1277 = vmatprep.subr.bf16.mxu1 %v2161_v51 }
  0xbf   : > { %1033 = vmatpush1.bf16.msra.mxu0 %v2109_v19  ;;  %v2168_v19 = vld [vmem:[#allocation7 + $0xb0] ss:$12 sps:$4 sm:$0xff]  }
  0xc0   : > { %1034 = vmatprep.subr.bf16.mxu0 %v2114_v20 }
  0xc1   : > { %1278 = vmatpush1.bf16.msra.mxu1 %v2159_v52 }
  0xc2   : > { %1279 = vmatprep.subr.bf16.mxu1 %v2164_v53 }
  0xc3   : > { %1035 = vmatpush1.bf16.msra.mxu0 %v2112_v21  ;;  %v2169_v21 = vld [vmem:[#allocation7 + $0x98] ss:$12 sps:$4 sm:$0xff]  }
  0xc4   : > { %1036 = vmatprep.subr.bf16.mxu0 %v2117_v22  ;;  %v2170_v22 = vld [vmem:[#allocation7 + $0x80] ss:$12 sps:$4 sm:$0xff]  }
  0xc5   : > { %1280 = vmatpush1.bf16.msra.mxu1 %v2162_v54 }
  0xc6   : > { %1281 = vmatprep.subr.bf16.mxu1 %v2167_v55 }
  0xc7   : > { %1037 = vmatpush1.bf16.msra.mxu0 %v2115_v23  ;;  %v2171_v23 = vld [vmem:[#allocation7 + $0x68] ss:$12 sps:$4 sm:$0xff]  }
  0xc8   : > { %1038 = vmatprep.subr.bf16.mxu0 %v2120_v24  ;;  %v2172_v24 = vld [vmem:[#allocation7 + $0x50] ss:$12 sps:$4 sm:$0xff]  }
  0xc9   : > { %1282 = vmatpush1.bf16.msra.mxu1 %v2165_v56 }
  0xca   : > { %1853 = vmatprep.subr.bf16.mxu1 %v2379_v58 }
  0xcb   : > { %1039 = vmatpush2.bf16.msra.mxu0 %v2118_v25  ;;  %v2173_v25 = vld [vmem:[#allocation7 + $0x38] ss:$12 sps:$4 sm:$0xff]  }
  0xcc   : > { %1040 = vmatprep.subr.bf16.mxu0 %v2123_v26  ;;  %v2174_v26 = vld [vmem:[#allocation7 + $0x20] ss:$12 sps:$4 sm:$0xff]  }
  0xcf   : > { %1041 = vmatpush2.bf16.msra.mxu0 %v2121_v27  ;;  %v2175_v27 = vld [vmem:[#allocation7 + $0x8] ss:$12 sps:$4 sm:$0xff]  }
  0xd0   : > { %1042 = vmatprep.subr.bf16.mxu0 %v2126_v28  ;;  %v1130_v28 = vsub.s32 1, %v2579_v4 }
  0xd3   : > { %1043 = vmatpush2.bf16.msra.mxu0 %v2124_v29  ;;  %v1122_v29 = vld [vmem:[%s2671_s4] sm:$0x7] }
  0xd4   : > { %1044 = vmatprep.subr.bf16.mxu0 %v2129_v30  ;;  %v1131_v30 = vrot.slane %v1122_v29, %v1130_v28  ;;  %v1135_v42 = vrot.slane %v1122_v29, %v1134_v41 }
  0xd7   : > { %1045 = vmatpush2.bf16.msra.mxu0 %v2127_v31  ;;  %v1126_v31 = vsub.s32 0, %v2579_v4 }
  0xd8   : > { %1046 = vmatprep.subr.bf16.mxu0 %v2132_v32 }
  0xdb   : > { %1047 = vmatpush2.bf16.msra.mxu0 %v2130_v33 }
  0xdc   : > { %1048 = vmatprep.subr.bf16.mxu0 %v2135_v34 }
  0xdf   : > { %1049 = vmatpush2.bf16.msra.mxu0 %v2133_v35  ;;  %v1127_v35 = vrot.slane %v1122_v29, %v1126_v31 }
  0xe0   : > { %1050 = vmatprep.subr.bf16.mxu0 %v2138_v36 }
  0xe3   : > { %1051 = vmatpush2.bf16.msra.mxu0 %v2136_v37 }
  0xe4   : > { %1052 = vmatprep.subr.bf16.mxu0 %v2141_v38 }
  0xe7   : > { %1053 = vmatpush2.bf16.msra.mxu0 %v2139_v39 }
  0xe8   : > { %1885 = vmatprep.subr.bf16.mxu0 %v2379_v58 }
  0xea   : > { %1055 = vmatmul.mubr.bf16.vlgmr.msra.gmra.mxu0 %v1694_v40 }
  0xeb   : > { %1901 = vmatprep.mubr.msk.bf16.mxu0 %vm2380_vm0, %v2379_v58 }
 0x16a   : > { %v974_v59 = vpop.f32.mrf.mxu0 }
 0x16b   : > { %v1015_v60 = vpop.f32.mrf.mxu1 }
 0x16c   : > { %v976_v61 = vpop.f32.mrf.mxu0  ;;  %v1016_v6 = vadd.f32 %v1015_v60, %v974_v59 }
 0x16d   : > { %v1017_v62 = vpop.f32.mrf.mxu1 }
 0x16e   : > { %v978_v63 = vpop.f32.mrf.mxu0  ;;  %v1018_v8 = vadd.f32 %v1017_v62, %v976_v61  ;;  %v2176_v61 = vld [vmem:[#allocation8 + $0x38] sm:$0xff]   ;;  %v2177_v62 = vld [vmem:[#allocation8 + $0x30] sm:$0xff]  }
 0x16f   : > { %v1019_v0 = vpop.f32.mrf.mxu1  ;;  %1886 = vmatpush3.bf16.msra.mxu0 %v2176_v61  ;;  %v2178_v63 = vld [vmem:[#allocation8 + $0x28] sm:$0xff]  }
 0x170   : > { %v979_v1 = vpop.f32.mrf.mxu0  ;;  %1887 = vmatprep.subr.bf16.mxu0 %v2379_v58  ;;  %v2179_v0 = vld [vmem:[#allocation8 + $0x20] sm:$0xff]  }
 0x171   : > { %v1020_v2 = vpop.f32.mrf.mxu1  ;;  %v2180_v1 = vld [vmem:[#allocation8 + $0x18] sm:$0xff]  }
 0x172   : > { %v2181_v2 = vld [vmem:[#allocation8 + $0x10] sm:$0xff]  }
 0x173   : > { %1888 = vmatpush3.bf16.msra.mxu0 %v2177_v62 }
 0x174   : > { %1889 = vmatprep.subr.bf16.mxu0 %v2379_v58 }
 0x177   : > { %1890 = vmatpush3.bf16.msra.mxu0 %v2178_v63 }
 0x178   : > { %1891 = vmatprep.subr.bf16.mxu0 %v2379_v58 }
 0x17b   : > { %1892 = vmatpush3.bf16.msra.mxu0 %v2179_v0 }
 0x17c   : > { %1893 = vmatprep.subr.bf16.mxu0 %v2379_v58 }
 0x17f   : > { %1894 = vmatpush3.bf16.msra.mxu0 %v2180_v1 }
 0x180   : > { %1895 = vmatprep.subr.bf16.mxu0 %v2379_v58 }
 0x183   : > { %1896 = vmatpush3.bf16.msra.mxu0 %v2181_v2 }
 0x184   : > { %1897 = vmatprep.subr.bf16.mxu0 %v2379_v58 }
 0x187   : > { %1898 = vmatpush3.bf16.msra.mxu0 %v2182_v3 }
 0x188   : > { %1899 = vmatprep.subr.bf16.mxu0 %v2379_v58 }
 0x1aa   : > { %v1056_v7 = vpop.f32.mrf.mxu0 }
 0x1ab   : > { %v1057_v9 = vadd.f32 %v1056_v7, %v1016_v6 }
 0x1ac   : > { %v1058_v10 = vpop.f32.mrf.mxu0 }
 0x1ad   : > { %v1063_v11 = vrot.slane %v1057_v9, 7  ;;  %v1059_v12 = vadd.f32 %v1058_v10, %v1018_v8  ;;  %v2183_v8 = vld [vmem:[#allocation8] sm:$0xff]  }
 0x1ae   : > { %v1060_v13 = vpop.f32.mrf.mxu0  ;;  %1900 = vmatpush3.bf16.msra.mxu0 %v2183_v8 }
 0x1af   : > { %v1079_v14 = vsel %vm1078_vm1, 0.0, %v1063_v11 }
 0x1b0   : > { %v1080_v16 = vadd.f32 %v1079_v14, %v1059_v12  ;;  %v1061_v17 = vpop.f32.mrf.mxu0 }
 0x1b2   : > { %v1088_v18 = vadd.f32 %v1792_v15, %v1080_v16 }
 0x1b4   : > { %v1089_v20 = vpack.c.bf16 %v1088_v18, %v1088_v18 }
 0x1b6   : > { %1300 = vmatmul.mubr.bf16.vlgmr.msra.gmra.mxu1 %v1089_v20 }
 0x1b7   : > { %1854 = vmatpush3.bf16.msra.mxu1 %v2168_v19  ;;  %1869 = vmatprep.mubr.msk.bf16.mxu1 %vm2380_vm0, %v2379_v58 }
 0x1b8   : > { %1855 = vmatprep.subr.bf16.mxu1 %v2379_v58 }
 0x1bb   : > { %1856 = vmatpush3.bf16.msra.mxu1 %v2169_v21 }
 0x1bc   : > { %1857 = vmatprep.subr.bf16.mxu1 %v2379_v58 }
 0x1bf   : > { %1858 = vmatpush3.bf16.msra.mxu1 %v2170_v22 }
 0x1c0   : > { %1859 = vmatprep.subr.bf16.mxu1 %v2379_v58 }
 0x1c3   : > { %1860 = vmatpush3.bf16.msra.mxu1 %v2171_v23 }
 0x1c4   : > { %1861 = vmatprep.subr.bf16.mxu1 %v2379_v58 }
 0x1c7   : > { %1862 = vmatpush3.bf16.msra.mxu1 %v2172_v24 }
 0x1c8   : > { %1863 = vmatprep.subr.bf16.mxu1 %v2379_v58 }
 0x1cb   : > { %1864 = vmatpush3.bf16.msra.mxu1 %v2173_v25 }
 0x1cc   : > { %1865 = vmatprep.subr.bf16.mxu1 %v2379_v58 }
 0x1cf   : > { %1866 = vmatpush3.bf16.msra.mxu1 %v2174_v26 }
 0x1d0   : > { %1867 = vmatprep.subr.bf16.mxu1 %v2379_v58 }
 0x1d3   : > { %1868 = vmatpush3.bf16.msra.mxu1 %v2175_v27 }
 0x1d4   : > { %1873 = vmatprep.subr.bf16.mxu1 %v2379_v58 }
 0x1d6   : > { %1870 = vmatmul.mubr.bf16.vlgmr.msra.gmra.mxu1 %v1089_v20 }
 0x1d7   : > { %1875 = vmatprep.mubr.msk.bf16.mxu1 %vm2380_vm0, %v2379_v58 }
 0x276   : > { %v1301_v32 = vpop.f32.mrf.mxu1 }
 0x277   : > { %v1302_v39 = vadd.f32 %v1301_v32, %v1127_v35 }
 0x278   : > { %v1303_v33 = vpop.f32.mrf.mxu1 }
 0x279   : > { %v1304_v34 = vadd.f32 %v1303_v33, %v1131_v30  ;;  %v1348_v40 = vpack.c.bf16 %v1302_v39, %v1302_v39 }
 0x27a   : > { %v1305_v36 = vpop.f32.mrf.mxu1 }
 0x27b   : > { %v1349_v37 = vpack.c.bf16 %v1304_v34, %v1304_v34 }
 0x27c   : > { %v1306_v38 = vpop.f32.mrf.mxu1 }
 0x27d   : > { %1874 = vmatpush3.bf16.xpose.msra.mxu1 %v1349_v37 }
 0x27e   : > { %1879 = vmatprep.subr.bf16.mxu1 %v2379_v58 }
 0x284   : > { %1876 = vmatmul.mubr.bf16.vlgmr.msra.gmra.mxu1 %v1348_v40 }
 0x285   : > { %1881 = vmatprep.mubr.msk.bf16.mxu1 %vm2380_vm0, %v2379_v58  ;;  %v1818_v58 = vld [vmem:[%s2673_s6] ss:$0 sm:$0xff] }
 0x296   : > { %v1342_v43 = vpop.f32.mrf.mxu1 }
 0x297   : > { %v1343_v44 = vadd.f32 %v1342_v43, %v1135_v42 }
 0x298   : > { %v1871_v45 = vpop.f32.mrf.mxu1 }
 0x299   : > { %v1350_v46 = vpack.c.bf16 %v1343_v44, %v1343_v44 }
 0x29a   : > { %v1345_v47 = vpop.f32.mrf.mxu1 }
 0x29b   : > { %v1409_v48 = vsel %vm1407_vm2, %v1350_v46, 0 }
 0x29c   : > { %v1872_v49 = vpop.f32.mrf.mxu1  ;;  %1880 = vmatpush3.bf16.msra.mxu1 %v1409_v48 }
 0x344   : > { %v1385_v50 = vpop.f32.mrf.mxu1 }
 0x345   : > { %v1392_v51 = vsel %vm1391_vm3, %v1385_v50, -inf }
 0x346   : > { %1393 = vmax.xlane.f32.xlu0 %v1392_v51  ;;  %v1877_v52 = vpop.f32.mrf.mxu1 }
 0x348   : > { %v1388_v53 = vpop.f32.mrf.mxu1 }
 0x34a   : > { %v1878_v54 = vpop.f32.mrf.mxu1 }
 0x3cf   : > { %v1394_v55 = vpop.xlane.xlu0 %1393 }
 0x3d0   : > { %v1395_v56 = vsub.f32 %v1385_v50, %v1394_v55 }
 0x3d2   : > { %v1396_v57 = vmul.f32 1.442695, %v1395_v56 }
 0x3d4   : > { %2184 = vpow2.f32 %v1396_v57 }
 0x3e1   : > { %v2185_v59 = vpop.eup %2184 }
 0x3e2   : > { %v1398_v60 = vsel %vm1391_vm3, %v2185_v59, 0.0 }
 0x3e3   : > { %1399 = vadd.xlane.f32.xlu0 %v1398_v60 }
 0x46c   : > { %v1400_v4 = vpop.xlane.xlu0 %1399 }
 0x46d   : > { %2186 = vrcp.f32 %v1400_v4 }
 0x47a   : > { %v2187_v5 = vpop.eup %2186 }
 0x47b   : > { %v1402_v6 = vmul.f32 %v2187_v5, %v2185_v59 }
 0x47d   : > { %v1403_v7 = vpack.c.bf16 %v1402_v6, %v1402_v6 }
 0x47f   : > { %1882 = vmatmul.mubr.msk.bf16.vlgmr.msra.gmra.mxu1 %vm1391_vm3, %v1403_v7 }
 0x53f   : > { %v1445_v9 = vpop.f32.mrf.mxu1 }
 0x540   : > { %v1451_v10 = vpack.c.bf16 %v1445_v9, %v1445_v9 }
 0x541   : > { %v1883_v11 = vpop.f32.mrf.mxu1 }
 0x542   : > { %1902 = vmatmul.mubr.bf16.vlgmr.msra.gmra.mxu0 %v1451_v10 }
 0x543   : > { %v1448_v12 = vpop.f32.mrf.mxu1 }
 0x545   : > { %v1884_v13 = vpop.f32.mrf.mxu1 }
 0x602   : > { %v1557_v14 = vpop.f32.mrf.mxu0 }
 0x603   : > { %v1558_v15 = vadd.f32 %v1818_v58, %v1557_v14 }
 0x604   : > { %v1903_v16 = vpop.f32.mrf.mxu0 }
 0x605   : > { %v1563_v17 = vpack.c.bf16 %v1558_v15, %v1558_v15 }
 0x606   : > { %v1560_v18 = vpop.f32.mrf.mxu0 }
 0x607   : > { %1564 = vst [vmem:[%s338_s23] sm:$0xf] %v1563_v17 }
 0x608   : > { %v1904_v19 = vpop.f32.mrf.mxu0 }
 0x609   : > { %2307 = shalt.err (!%p2304_p9)
}
 0x60a   : > { %s2308_s9 = scalar_lea.hbm %s2624_s19, 64  ;;  %s2312_s15 = scalar_lea.hbm %s2674_s7, 128 }
 0x60b   : > { %p2309_p13 = scmp.ne.s32.totalorder %s2624_s19, %s2308_s9  ;;  %p2313_p8 = scmp.lt.s32.totalorder %s2624_s19, %s2674_s7 }
 0x60c   : > { %p2314_p2 = scmp.lt.s32.totalorder %s2312_s15, %s2308_s9 }
 0x60d   : > { %p2310_p7 = pnand %p2309_p13, %p2696_p0 }
 0x60e   : > { %p2315_p11 = por %p2314_p2, %p2313_p8 }
 0x60f   : > { %p2311_p4 = pneg %p2310_p7 }
 0x611   : > { %p2316_p12 = pnand %p2315_p11, %p2311_p4 }
 0x613   : > { %2319 = shalt.err (!%p2316_p12)
}
 0x614   : > { %1922 = dma.vmem_to_hbm [thread:$0]  (%p2696_p0), %s2626_s29, 64, %s2624_s19, %s1566_s20  }
 0x615 PF: > { %s1591_s13 = sand.u32 1, %s2354_s24   ;;  %p2697_p5 = scmp.ne.s32.totalorder %s2682_s8, 0 }
 0x616   : > { %p2698_p10 = scmp.ge.s32.totalorder %s2366_s27, 2  ;;  %s1592_s23 = scalar_lea.sflag [#allocation4], %s1591_s13 }
 0x618   : > { %p1939_p1 = pnand %p2698_p10, %p2697_p5 }
 0x61a   : > { %p1940_p3 = pneg %p1939_p1 }
 0x61c   : > { %2349 = dma.done.wait (%p1940_p3), %s1592_s23, 64  }
 0x61d   : > { %2351 = vsyncadd (%p1940_p3), %s1592_s23, 4294967232  ;;  %p22_p6 = scmp.ge.s32.totalorder %s2502_s18, 4   ;;  %s2699_s24 = smov %s2358_s25 }
 0x61e   : > { %s2700_s25 = smov %s2362_s26  ;;  %s2701_s26 = smov %s2512_s21 }
 0x61f   : > { %s2702_s27 = smov %s2502_s18  ;;  %24 = sbr.rel (!%p22_p6) target bundleno = 10 (0xa), region = 105 }
 0x624   :  { %1597 = vsyncpa [#allocation3], 1 }
 0x625   :  { %1599 = vsyncpa [#allocation3 + $0x1], 1 }
 0x626   :  { %1600 = vsyncpa [#allocation6], 1 }
 0x627   :  { %1601 = vsyncpa [#allocation9], 1 }
 0x628   :  { %1602 = vsyncpa [#allocation4], 1 }
 0x629   :  { %1604 = vsyncpa [#allocation4 + $0x1], 1 }

</bundles_post_ra>
